<compile_context>
chip_gen: v7x
topology: tpu7x:2x2x1
jax: 0.10.0
libtpu: 0.0.40
codegen_flags: <defaults>
</compile_context>

<pallas_src>
import functools

import jax
import jax.numpy as jnp
from jax.experimental import pallas as pl
from jax.experimental.pallas import tpu as pltpu


LEAKY_SLOPE = 0.01  # nn.LeakyReLU default negative_slope
BN_EPS = 1e-5       # nn.BatchNorm1d default eps


class LayerConfig:
    def __init__(self, size=0, dropout=0.0, type="Dense", kernel_size=0, nfilters=0):
        self.size = size
        self.dropout = dropout
        self.type = type
        self.kernel_size = kernel_size
        self.nfilters = nfilters


# ---------------------------------------------------------------------------
# Single fused Pallas kernel: whole autoencoder forward
# ---------------------------------------------------------------------------
def _ae_fused_kernel(*refs, plan):
    """refs = (x_ref, [per stage: w, b, (gamma, beta if leaky_bn)], o_ref).

    plan is a static tuple of stage modes in order:
      "leaky_bn" : Linear -> LeakyReLU(0.01) -> BatchNorm1d (batch stats)
      "linear"   : plain Linear
      "sigmoid"  : Linear -> sigmoid
    Everything stays in vregs; only the final result is stored.
    """
    o_ref = refs[-1]
    it = iter(refs[:-1])

    h = next(it)[...]  # x, (B, in_size), float32

    for mode in plan:
        w = next(it)[...]            # (In, Out)
        b = next(it)[...]            # (1, Out)
        # MXU matmul with f32 accumulation.
        h = jnp.dot(h, w, preferred_element_type=jnp.float32) + b

        if mode == "leaky_bn":
            gamma = next(it)[...]    # (1, Out)
            beta = next(it)[...]     # (1, Out)
            # LeakyReLU (VPU)
            h = jnp.where(h > 0, h, LEAKY_SLOPE * h)
            # BatchNorm1d, training-mode statistics (biased var), eps=1e-5.
            mean = jnp.mean(h, axis=0, keepdims=True)
            var = jnp.mean(jnp.square(h - mean), axis=0, keepdims=True)
            h = (h - mean) * jax.lax.rsqrt(var + BN_EPS)   # rsqrt -> EUP
            h = h * gamma + beta
        elif mode == "sigmoid":
            h = jax.nn.sigmoid(h)                          # exp -> EUP
        # mode == "linear": nothing more to do

    o_ref[...] = h


def ae_forward(x, stages):
    """Run the whole autoencoder in one pallas_call.

    stages: list of (w, b, gamma, beta, mode). gamma/beta are ignored (and not
    DMA'd) for modes other than "leaky_bn".
    """
    plan = tuple(stage[-1] for stage in stages)

    args = [x.astype(jnp.float32)]
    for (w, b, gamma, beta, mode) in stages:
        args.append(w.astype(jnp.float32))
        args.append(b.reshape(1, -1).astype(jnp.float32))
        if mode == "leaky_bn":
            args.append(gamma.reshape(1, -1).astype(jnp.float32))
            args.append(beta.reshape(1, -1).astype(jnp.float32))

    batch = x.shape[0]
    out_dim = stages[-1][0].shape[1]

    kernel = functools.partial(_ae_fused_kernel, plan=plan)
    return pl.pallas_call(
        kernel,
        out_shape=jax.ShapeDtypeStruct((batch, out_dim), jnp.float32),
        in_specs=[pl.BlockSpec(memory_space=pltpu.MemorySpace.VMEM)] * len(args),
        out_specs=pl.BlockSpec(memory_space=pltpu.MemorySpace.VMEM),
    )(*args)


# ---------------------------------------------------------------------------
# Parameter construction (deterministic, mirrors AEModel.__init__ shapes)
# ---------------------------------------------------------------------------
def _init_linear(key, fan_in, fan_out):
    # PyTorch nn.Linear default init: U(-1/sqrt(fan_in), 1/sqrt(fan_in))
    kw, kb = jax.random.split(key)
    bound = 1.0 / float(fan_in) ** 0.5
    w = jax.random.uniform(kw, (fan_in, fan_out), jnp.float32, -bound, bound)
    b = jax.random.uniform(kb, (fan_out,), jnp.float32, -bound, bound)
    return w, b


def build_ae_params(key, layer_config, in_size, out_size, bottleneck_size):
    """Returns a list of stages: (w, b, gamma, beta, mode)."""
    keys = iter(jax.random.split(key, 64))
    stages = []

    def add_block(cfgs, input_size):
        for lyr in cfgs:
            w, b = _init_linear(next(keys), input_size, lyr.size)
            gamma = jnp.ones((lyr.size,), jnp.float32)   # BN weight default
            beta = jnp.zeros((lyr.size,), jnp.float32)   # BN bias default
            stages.append((w, b, gamma, beta, "leaky_bn"))
            input_size = lyr.size
        return input_size

    # encoder
    add_block(layer_config, in_size)

    # fc1 / fc_bottle / fc2 (plain Linears; gamma/beta placeholders are unused)
    bottleneck_input = layer_config[-1].size
    for fin, fout in (
        (bottleneck_input, bottleneck_size),
        (bottleneck_size, bottleneck_size),
        (bottleneck_size, bottleneck_input),
    ):
        w, b = _init_linear(next(keys), fin, fout)
        stages.append((w, b, None, None, "linear"))

    # decoder
    rev = list(reversed(layer_config))
    add_block(rev[1:], rev[0].size)
    w, b = _init_linear(next(keys), rev[-1].size, out_size)
    stages.append((w, b, None, None, "sigmoid"))
    return stages


# ---------------------------------------------------------------------------
if __name__ == "__main__":
    key = jax.random.PRNGKey(0)
    k_params, k_x = jax.random.split(key)

    # Small shapes consistent with the module's forward
    batch = 4
    in_size = 40
    out_size = 40
    bottleneck_size = 8
    layer_config = [LayerConfig(size=32, dropout=0.0),
                    LayerConfig(size=16, dropout=0.0)]

    stages = build_ae_params(k_params, layer_config, in_size, out_size,
                             bottleneck_size)

    x = jax.random.normal(k_x, (batch, in_size), jnp.float32)

    reconstruction = ae_forward(x, stages)
    reconstruction = jax.block_until_ready(reconstruction)

    assert reconstruction.shape == (batch, out_size)
    assert reconstruction.dtype == jnp.float32
    # sigmoid output range sanity check (inclusive bounds to avoid fp32
    # saturation fragility)
    assert bool(jnp.all((reconstruction >= 0.0) & (reconstruction <= 1.0)))

    print("KERNEL_OK")
</pallas_src>

<mosaic_0001>
module attributes {stable_mosaic.version = 11 : i64} {
  func.func @_ae_fused_kernel(%arg0: memref<4x40xf32, #tpu.memory_space<vmem>>, %arg1: memref<40x32xf32, #tpu.memory_space<vmem>>, %arg2: memref<1x32xf32, #tpu.memory_space<vmem>>, %arg3: memref<1x32xf32, #tpu.memory_space<vmem>>, %arg4: memref<1x32xf32, #tpu.memory_space<vmem>>, %arg5: memref<32x16xf32, #tpu.memory_space<vmem>>, %arg6: memref<1x16xf32, #tpu.memory_space<vmem>>, %arg7: memref<1x16xf32, #tpu.memory_space<vmem>>, %arg8: memref<1x16xf32, #tpu.memory_space<vmem>>, %arg9: memref<16x8xf32, #tpu.memory_space<vmem>>, %arg10: memref<1x8xf32, #tpu.memory_space<vmem>>, %arg11: memref<8x8xf32, #tpu.memory_space<vmem>>, %arg12: memref<1x8xf32, #tpu.memory_space<vmem>>, %arg13: memref<8x16xf32, #tpu.memory_space<vmem>>, %arg14: memref<1x16xf32, #tpu.memory_space<vmem>>, %arg15: memref<16x32xf32, #tpu.memory_space<vmem>>, %arg16: memref<1x32xf32, #tpu.memory_space<vmem>>, %arg17: memref<1x32xf32, #tpu.memory_space<vmem>>, %arg18: memref<1x32xf32, #tpu.memory_space<vmem>>, %arg19: memref<32x40xf32, #tpu.memory_space<vmem>>, %arg20: memref<1x40xf32, #tpu.memory_space<vmem>>, %arg21: memref<4x40xf32, #tpu.memory_space<vmem>>) attributes {dimension_semantics = [], scalar_prefetch = 0 : i64, scratch_operands = 0 : i64, tpu.core_type = #tpu.core_type<tc>} {
    %c0 = arith.constant 0 : index
    %c0_0 = arith.constant 0 : index
    %0 = vector.load %arg0[%c0, %c0_0] : memref<4x40xf32, #tpu.memory_space<vmem>>, vector<4x40xf32>
    %c0_1 = arith.constant 0 : index
    %c0_2 = arith.constant 0 : index
    %1 = vector.load %arg1[%c0_1, %c0_2] : memref<40x32xf32, #tpu.memory_space<vmem>>, vector<40x32xf32>
    %c0_3 = arith.constant 0 : index
    %c0_4 = arith.constant 0 : index
    %2 = vector.load %arg2[%c0_3, %c0_4] : memref<1x32xf32, #tpu.memory_space<vmem>>, vector<1x32xf32>
    %cst = arith.constant dense<0.000000e+00> : vector<4x32xf32>
    %3 = tpu.matmul %0, %1, %cst {dimension_numbers = #tpu.dot_dimension_numbers<[1], [0], [0], [1], [0, 0, 1, 1], [], []>} : vector<4x40xf32>, vector<40x32xf32>, vector<4x32xf32> -> vector<4x32xf32>
    %4 = vector.broadcast %2 : vector<1x32xf32> to vector<4x32xf32>
    %5 = arith.addf %3, %4 : vector<4x32xf32>
    %c0_5 = arith.constant 0 : index
    %c0_6 = arith.constant 0 : index
    %6 = vector.load %arg3[%c0_5, %c0_6] : memref<1x32xf32, #tpu.memory_space<vmem>>, vector<1x32xf32>
    %c0_7 = arith.constant 0 : index
    %c0_8 = arith.constant 0 : index
    %7 = vector.load %arg4[%c0_7, %c0_8] : memref<1x32xf32, #tpu.memory_space<vmem>>, vector<1x32xf32>
    %cst_9 = arith.constant 0.000000e+00 : f32
    %8 = vector.broadcast %cst_9 : f32 to vector<4x32xf32>
    %9 = arith.cmpf ogt, %5, %8 : vector<4x32xf32>
    %cst_10 = arith.constant 0.00999999977 : f32
    %10 = vector.broadcast %cst_10 : f32 to vector<4x32xf32>
    %11 = arith.mulf %10, %5 : vector<4x32xf32>
    %12 = arith.select %9, %5, %11 : vector<4x32xi1>, vector<4x32xf32>
    %cst_11 = arith.constant dense<0.000000e+00> : vector<32xf32>
    %13 = vector.multi_reduction <add>, %12, %cst_11 [0] : vector<4x32xf32> to vector<32xf32>
    %14 = vector.shape_cast %13 : vector<32xf32> to vector<1x32xf32>
    %cst_12 = arith.constant 4.000000e+00 : f32
    %15 = vector.broadcast %cst_12 : f32 to vector<1x32xf32>
    %16 = arith.divf %14, %15 : vector<1x32xf32>
    %17 = vector.broadcast %16 : vector<1x32xf32> to vector<4x32xf32>
    %18 = arith.subf %12, %17 : vector<4x32xf32>
    %19 = arith.mulf %18, %18 : vector<4x32xf32>
    %cst_13 = arith.constant dense<0.000000e+00> : vector<32xf32>
    %20 = vector.multi_reduction <add>, %19, %cst_13 [0] : vector<4x32xf32> to vector<32xf32>
    %21 = vector.shape_cast %20 : vector<32xf32> to vector<1x32xf32>
    %cst_14 = arith.constant 4.000000e+00 : f32
    %22 = vector.broadcast %cst_14 : f32 to vector<1x32xf32>
    %23 = arith.divf %21, %22 : vector<1x32xf32>
    %24 = vector.broadcast %16 : vector<1x32xf32> to vector<4x32xf32>
    %25 = arith.subf %12, %24 : vector<4x32xf32>
    %cst_15 = arith.constant 9.99999974E-6 : f32
    %26 = vector.broadcast %cst_15 : f32 to vector<1x32xf32>
    %27 = arith.addf %23, %26 : vector<1x32xf32>
    %28 = math.rsqrt %27 : vector<1x32xf32>
    %29 = vector.broadcast %28 : vector<1x32xf32> to vector<4x32xf32>
    %30 = arith.mulf %25, %29 : vector<4x32xf32>
    %31 = vector.broadcast %6 : vector<1x32xf32> to vector<4x32xf32>
    %32 = arith.mulf %30, %31 : vector<4x32xf32>
    %33 = vector.broadcast %7 : vector<1x32xf32> to vector<4x32xf32>
    %34 = arith.addf %32, %33 : vector<4x32xf32>
    %c0_16 = arith.constant 0 : index
    %c0_17 = arith.constant 0 : index
    %35 = vector.load %arg5[%c0_16, %c0_17] : memref<32x16xf32, #tpu.memory_space<vmem>>, vector<32x16xf32>
    %c0_18 = arith.constant 0 : index
    %c0_19 = arith.constant 0 : index
    %36 = vector.load %arg6[%c0_18, %c0_19] : memref<1x16xf32, #tpu.memory_space<vmem>>, vector<1x16xf32>
    %cst_20 = arith.constant dense<0.000000e+00> : vector<4x16xf32>
    %37 = tpu.matmul %34, %35, %cst_20 {dimension_numbers = #tpu.dot_dimension_numbers<[1], [0], [0], [1], [0, 0, 1, 1], [], []>} : vector<4x32xf32>, vector<32x16xf32>, vector<4x16xf32> -> vector<4x16xf32>
    %38 = vector.broadcast %36 : vector<1x16xf32> to vector<4x16xf32>
    %39 = arith.addf %37, %38 : vector<4x16xf32>
    %c0_21 = arith.constant 0 : index
    %c0_22 = arith.constant 0 : index
    %40 = vector.load %arg7[%c0_21, %c0_22] : memref<1x16xf32, #tpu.memory_space<vmem>>, vector<1x16xf32>
    %c0_23 = arith.constant 0 : index
    %c0_24 = arith.constant 0 : index
    %41 = vector.load %arg8[%c0_23, %c0_24] : memref<1x16xf32, #tpu.memory_space<vmem>>, vector<1x16xf32>
    %cst_25 = arith.constant 0.000000e+00 : f32
    %42 = vector.broadcast %cst_25 : f32 to vector<4x16xf32>
    %43 = arith.cmpf ogt, %39, %42 : vector<4x16xf32>
    %cst_26 = arith.constant 0.00999999977 : f32
    %44 = vector.broadcast %cst_26 : f32 to vector<4x16xf32>
    %45 = arith.mulf %44, %39 : vector<4x16xf32>
    %46 = arith.select %43, %39, %45 : vector<4x16xi1>, vector<4x16xf32>
    %cst_27 = arith.constant dense<0.000000e+00> : vector<16xf32>
    %47 = vector.multi_reduction <add>, %46, %cst_27 [0] : vector<4x16xf32> to vector<16xf32>
    %48 = vector.shape_cast %47 : vector<16xf32> to vector<1x16xf32>
    %cst_28 = arith.constant 4.000000e+00 : f32
    %49 = vector.broadcast %cst_28 : f32 to vector<1x16xf32>
    %50 = arith.divf %48, %49 : vector<1x16xf32>
    %51 = vector.broadcast %50 : vector<1x16xf32> to vector<4x16xf32>
    %52 = arith.subf %46, %51 : vector<4x16xf32>
    %53 = arith.mulf %52, %52 : vector<4x16xf32>
    %cst_29 = arith.constant dense<0.000000e+00> : vector<16xf32>
    %54 = vector.multi_reduction <add>, %53, %cst_29 [0] : vector<4x16xf32> to vector<16xf32>
    %55 = vector.shape_cast %54 : vector<16xf32> to vector<1x16xf32>
    %cst_30 = arith.constant 4.000000e+00 : f32
    %56 = vector.broadcast %cst_30 : f32 to vector<1x16xf32>
    %57 = arith.divf %55, %56 : vector<1x16xf32>
    %58 = vector.broadcast %50 : vector<1x16xf32> to vector<4x16xf32>
    %59 = arith.subf %46, %58 : vector<4x16xf32>
    %cst_31 = arith.constant 9.99999974E-6 : f32
    %60 = vector.broadcast %cst_31 : f32 to vector<1x16xf32>
    %61 = arith.addf %57, %60 : vector<1x16xf32>
    %62 = math.rsqrt %61 : vector<1x16xf32>
    %63 = vector.broadcast %62 : vector<1x16xf32> to vector<4x16xf32>
    %64 = arith.mulf %59, %63 : vector<4x16xf32>
    %65 = vector.broadcast %40 : vector<1x16xf32> to vector<4x16xf32>
    %66 = arith.mulf %64, %65 : vector<4x16xf32>
    %67 = vector.broadcast %41 : vector<1x16xf32> to vector<4x16xf32>
    %68 = arith.addf %66, %67 : vector<4x16xf32>
    %c0_32 = arith.constant 0 : index
    %c0_33 = arith.constant 0 : index
    %69 = vector.load %arg9[%c0_32, %c0_33] : memref<16x8xf32, #tpu.memory_space<vmem>>, vector<16x8xf32>
    %c0_34 = arith.constant 0 : index
    %c0_35 = arith.constant 0 : index
    %70 = vector.load %arg10[%c0_34, %c0_35] : memref<1x8xf32, #tpu.memory_space<vmem>>, vector<1x8xf32>
    %cst_36 = arith.constant dense<0.000000e+00> : vector<4x8xf32>
    %71 = tpu.matmul %68, %69, %cst_36 {dimension_numbers = #tpu.dot_dimension_numbers<[1], [0], [0], [1], [0, 0, 1, 1], [], []>} : vector<4x16xf32>, vector<16x8xf32>, vector<4x8xf32> -> vector<4x8xf32>
    %72 = vector.broadcast %70 : vector<1x8xf32> to vector<4x8xf32>
    %73 = arith.addf %71, %72 : vector<4x8xf32>
    %c0_37 = arith.constant 0 : index
    %c0_38 = arith.constant 0 : index
    %74 = vector.load %arg11[%c0_37, %c0_38] : memref<8x8xf32, #tpu.memory_space<vmem>>, vector<8x8xf32>
    %c0_39 = arith.constant 0 : index
    %c0_40 = arith.constant 0 : index
    %75 = vector.load %arg12[%c0_39, %c0_40] : memref<1x8xf32, #tpu.memory_space<vmem>>, vector<1x8xf32>
    %cst_41 = arith.constant dense<0.000000e+00> : vector<4x8xf32>
    %76 = tpu.matmul %73, %74, %cst_41 {dimension_numbers = #tpu.dot_dimension_numbers<[1], [0], [0], [1], [0, 0, 1, 1], [], []>} : vector<4x8xf32>, vector<8x8xf32>, vector<4x8xf32> -> vector<4x8xf32>
    %77 = vector.broadcast %75 : vector<1x8xf32> to vector<4x8xf32>
    %78 = arith.addf %76, %77 : vector<4x8xf32>
    %c0_42 = arith.constant 0 : index
    %c0_43 = arith.constant 0 : index
    %79 = vector.load %arg13[%c0_42, %c0_43] : memref<8x16xf32, #tpu.memory_space<vmem>>, vector<8x16xf32>
    %c0_44 = arith.constant 0 : index
    %c0_45 = arith.constant 0 : index
    %80 = vector.load %arg14[%c0_44, %c0_45] : memref<1x16xf32, #tpu.memory_space<vmem>>, vector<1x16xf32>
    %cst_46 = arith.constant dense<0.000000e+00> : vector<4x16xf32>
    %81 = tpu.matmul %78, %79, %cst_46 {dimension_numbers = #tpu.dot_dimension_numbers<[1], [0], [0], [1], [0, 0, 1, 1], [], []>} : vector<4x8xf32>, vector<8x16xf32>, vector<4x16xf32> -> vector<4x16xf32>
    %82 = vector.broadcast %80 : vector<1x16xf32> to vector<4x16xf32>
    %83 = arith.addf %81, %82 : vector<4x16xf32>
    %c0_47 = arith.constant 0 : index
    %c0_48 = arith.constant 0 : index
    %84 = vector.load %arg15[%c0_47, %c0_48] : memref<16x32xf32, #tpu.memory_space<vmem>>, vector<16x32xf32>
    %c0_49 = arith.constant 0 : index
    %c0_50 = arith.constant 0 : index
    %85 = vector.load %arg16[%c0_49, %c0_50] : memref<1x32xf32, #tpu.memory_space<vmem>>, vector<1x32xf32>
    %cst_51 = arith.constant dense<0.000000e+00> : vector<4x32xf32>
    %86 = tpu.matmul %83, %84, %cst_51 {dimension_numbers = #tpu.dot_dimension_numbers<[1], [0], [0], [1], [0, 0, 1, 1], [], []>} : vector<4x16xf32>, vector<16x32xf32>, vector<4x32xf32> -> vector<4x32xf32>
    %87 = vector.broadcast %85 : vector<1x32xf32> to vector<4x32xf32>
    %88 = arith.addf %86, %87 : vector<4x32xf32>
    %c0_52 = arith.constant 0 : index
    %c0_53 = arith.constant 0 : index
    %89 = vector.load %arg17[%c0_52, %c0_53] : memref<1x32xf32, #tpu.memory_space<vmem>>, vector<1x32xf32>
    %c0_54 = arith.constant 0 : index
    %c0_55 = arith.constant 0 : index
    %90 = vector.load %arg18[%c0_54, %c0_55] : memref<1x32xf32, #tpu.memory_space<vmem>>, vector<1x32xf32>
    %cst_56 = arith.constant 0.000000e+00 : f32
    %91 = vector.broadcast %cst_56 : f32 to vector<4x32xf32>
    %92 = arith.cmpf ogt, %88, %91 : vector<4x32xf32>
    %cst_57 = arith.constant 0.00999999977 : f32
    %93 = vector.broadcast %cst_57 : f32 to vector<4x32xf32>
    %94 = arith.mulf %93, %88 : vector<4x32xf32>
    %95 = arith.select %92, %88, %94 : vector<4x32xi1>, vector<4x32xf32>
    %cst_58 = arith.constant dense<0.000000e+00> : vector<32xf32>
    %96 = vector.multi_reduction <add>, %95, %cst_58 [0] : vector<4x32xf32> to vector<32xf32>
    %97 = vector.shape_cast %96 : vector<32xf32> to vector<1x32xf32>
    %cst_59 = arith.constant 4.000000e+00 : f32
    %98 = vector.broadcast %cst_59 : f32 to vector<1x32xf32>
    %99 = arith.divf %97, %98 : vector<1x32xf32>
    %100 = vector.broadcast %99 : vector<1x32xf32> to vector<4x32xf32>
    %101 = arith.subf %95, %100 : vector<4x32xf32>
    %102 = arith.mulf %101, %101 : vector<4x32xf32>
    %cst_60 = arith.constant dense<0.000000e+00> : vector<32xf32>
    %103 = vector.multi_reduction <add>, %102, %cst_60 [0] : vector<4x32xf32> to vector<32xf32>
    %104 = vector.shape_cast %103 : vector<32xf32> to vector<1x32xf32>
    %cst_61 = arith.constant 4.000000e+00 : f32
    %105 = vector.broadcast %cst_61 : f32 to vector<1x32xf32>
    %106 = arith.divf %104, %105 : vector<1x32xf32>
    %107 = vector.broadcast %99 : vector<1x32xf32> to vector<4x32xf32>
    %108 = arith.subf %95, %107 : vector<4x32xf32>
    %cst_62 = arith.constant 9.99999974E-6 : f32
    %109 = vector.broadcast %cst_62 : f32 to vector<1x32xf32>
    %110 = arith.addf %106, %109 : vector<1x32xf32>
    %111 = math.rsqrt %110 : vector<1x32xf32>
    %112 = vector.broadcast %111 : vector<1x32xf32> to vector<4x32xf32>
    %113 = arith.mulf %108, %112 : vector<4x32xf32>
    %114 = vector.broadcast %89 : vector<1x32xf32> to vector<4x32xf32>
    %115 = arith.mulf %113, %114 : vector<4x32xf32>
    %116 = vector.broadcast %90 : vector<1x32xf32> to vector<4x32xf32>
    %117 = arith.addf %115, %116 : vector<4x32xf32>
    %c0_63 = arith.constant 0 : index
    %c0_64 = arith.constant 0 : index
    %118 = vector.load %arg19[%c0_63, %c0_64] : memref<32x40xf32, #tpu.memory_space<vmem>>, vector<32x40xf32>
    %c0_65 = arith.constant 0 : index
    %c0_66 = arith.constant 0 : index
    %119 = vector.load %arg20[%c0_65, %c0_66] : memref<1x40xf32, #tpu.memory_space<vmem>>, vector<1x40xf32>
    %cst_67 = arith.constant dense<0.000000e+00> : vector<4x40xf32>
    %120 = tpu.matmul %117, %118, %cst_67 {dimension_numbers = #tpu.dot_dimension_numbers<[1], [0], [0], [1], [0, 0, 1, 1], [], []>} : vector<4x32xf32>, vector<32x40xf32>, vector<4x40xf32> -> vector<4x40xf32>
    %121 = vector.broadcast %119 : vector<1x40xf32> to vector<4x40xf32>
    %122 = arith.addf %120, %121 : vector<4x40xf32>
    %123 = arith.negf %122 : vector<4x40xf32>
    %124 = math.exp %123 : vector<4x40xf32>
    %cst_68 = arith.constant 1.000000e+00 : f32
    %125 = vector.broadcast %cst_68 : f32 to vector<4x40xf32>
    %126 = arith.addf %125, %124 : vector<4x40xf32>
    %127 = arith.divf %125, %126 : vector<4x40xf32>
    %c0_69 = arith.constant 0 : index
    %c0_70 = arith.constant 0 : index
    %128 = vector.load %arg21[%c0_69, %c0_70] : memref<4x40xf32, #tpu.memory_space<vmem>>, vector<4x40xf32>
    tpu.vector_store %arg21[%c0_69, %c0_70], %127 {strides = array<i32>} : memref<4x40xf32, #tpu.memory_space<vmem>>, vector<4x40xf32>,
    return
  }
}

</mosaic_0001>

<bundles_post_ra>
// kernel: tpu_custom_call.1
= control target key start
LH: loop header
LB: loop body
LE: loop exit
PB: predicated region body
PF: predicated region fallthrough
CT: control target
= control target key end

     0   :  { %s1224_s0 = inlined_call_operand.vmem [shape: f32[4,40], index: 0, kind: input, shape index: {}]   ;;  %s1225_s1 = inlined_call_operand.vmem [shape: f32[40,32], index: 1, kind: input, shape index: {}]   ;;  %s1226_s2 = inlined_call_operand.vmem [shape: f32[1,32], index: 2, kind: input, shape index: {}]   ;;  %s1227_s3 = inlined_call_operand.vmem [shape: f32[1,32], index: 3, kind: input, shape index: {}]   ;;  %s1228_s4 = inlined_call_operand.vmem [shape: f32[1,32], index: 4, kind: input, shape index: {}]   ;;  %s1229_s5 = inlined_call_operand.vmem [shape: f32[32,16], index: 5, kind: input, shape index: {}]   ;;  %s1230_s6 = inlined_call_operand.vmem [shape: f32[1,16], index: 6, kind: input, shape index: {}]   ;;  %s1231_s7 = inlined_call_operand.vmem [shape: f32[1,16], index: 7, kind: input, shape index: {}]   ;;  %s1232_s8 = inlined_call_operand.vmem [shape: f32[1,16], index: 8, kind: input, shape index: {}]   ;;  %s1233_s9 = inlined_call_operand.vmem [shape: f32[16,8], index: 9, kind: input, shape index: {}]   ;;  %s1234_s10 = inlined_call_operand.vmem [shape: f32[1,8], index: 10, kind: input, shape index: {}]   ;;  %s1235_s11 = inlined_call_operand.vmem [shape: f32[8,8], index: 11, kind: input, shape index: {}]   ;;  %s1236_s12 = inlined_call_operand.vmem [shape: f32[1,8], index: 12, kind: input, shape index: {}]   ;;  %s1237_s13 = inlined_call_operand.vmem [shape: f32[8,16], index: 13, kind: input, shape index: {}]   ;;  %s1238_s14 = inlined_call_operand.vmem [shape: f32[1,16], index: 14, kind: input, shape index: {}]   ;;  %s1239_s15 = inlined_call_operand.vmem [shape: f32[16,32], index: 15, kind: input, shape index: {}]   ;;  %s1240_s16 = inlined_call_operand.vmem [shape: f32[1,32], index: 16, kind: input, shape index: {}]   ;;  %s1241_s17 = inlined_call_operand.vmem [shape: f32[1,32], index: 17, kind: input, shape index: {}]   ;;  %s1242_s18 = inlined_call_operand.vmem [shape: f32[1,32], index: 18, kind: input, shape index: {}]   ;;  %s1243_s19 = inlined_call_operand.vmem [shape: f32[32,40], index: 19, kind: input, shape index: {}]   ;;  %s1244_s20 = inlined_call_operand.vmem [shape: f32[1,40], index: 20, kind: input, shape index: {}]   ;;  %s1245_s21 = inlined_call_operand.hbm [shape: f32[4,40], index: 21, kind: output, shape index: {}]  }
   0x1   :  { %1248 = sst [smem:[#allocation5_spill]] %s1224_s0 }
   0x2   :  { %1249 = sst [smem:[#allocation6_spill]] %s1225_s1 }
   0x3   :  { %1250 = sst [smem:[#allocation7_spill]] %s1226_s2 }
   0x4   :  { %1251 = sst [smem:[#allocation8_spill]] %s1227_s3 }
   0x5   :  { %1252 = sst [smem:[#allocation9_spill]] %s1228_s4 }
   0x6   :  { %1253 = sst [smem:[#allocation10_spill]] %s1229_s5 }
   0x7   :  { %s1254_s26 = sld [smem:[#allocation6_spill]]  ;;  %v966_v3 = vmov 0.0|0.0   ;;  %vm967_vm0 = vmmov 0   ;;  %v968_v6 = vmov 0.0  }
   0x8   :  { %904 = vmatprep.subr.bf16.mxu0 %v966_v3  ;;  %855 = vmatprep.mubr.msk.f32.mxu0 %vm967_vm0, %v968_v6 }
   0x9   :  { %910 = vmatprep.subr.bf16.mxu1 %v966_v3  ;;  %866 = vmatprep.mubr.msk.f32.mxu1 %vm967_vm0, %v968_v6 }
   0xd   :  { %v70_v0 = vld [vmem:[%s1254_s26] sm:$0xff]  ;;  %v71_v1 = vld [vmem:[%s1254_s26 + $0x8] sm:$0xff]  ;;  %v72_v2 = vld [vmem:[%s1254_s26 + $0x10] sm:$0xff] }
   0xe   :  { %v905_v4 = vpack.c.bf16 %v71_v1, %v70_v0  ;;  %v73_v5 = vld [vmem:[%s1254_s26 + $0x18] sm:$0xff] }
   0xf   :  { %26 = vsyncpa [#allocation3], 0  ;;  %v908_v7 = vpack.c.bf16 %v73_v5, %v72_v2  ;;  %v74_v8 = vld [vmem:[%s1254_s26 + $0x20] sm:$0xff]  ;;  %s1255_s1 = sld [smem:[#allocation5_spill]]  ;;  %vm82_vm1 = vcmask 326656   ;;  %s1256_s25 = sld [smem:[#allocation10_spill]] }
  0x10   :  { %906 = vmatpush3.bf16.msra.mxu0 %v905_v4  ;;  %s1257_s5 = sld [smem:[#allocation7_spill]]  ;;  %vm161_vm3 = vcmask 257024   ;;  %vm209_vm4 = vcmask 261120   ;;  %v324_v47 = vld [vmem:[%s1233_s9] sm:$0xff]  ;;  %v325_v48 = vld [vmem:[%s1233_s9 + $0x8] sm:$0xff]  ;;  %vm288_vm6 = vcmask 125952  }
  0x11   :  { %907 = vmatprep.subr.bf16.mxu0 %v966_v3  ;;  %v917_v49 = vpack.c.bf16 %v325_v48, %v324_v47  ;;  %v802_v50 = vld [vmem:[%s1230_s6] ss:$0 sm:$0xff]  ;;  %vm333_vm7 = vcmask 130048   ;;  %vm415_vm8 = vcmask 64512   ;;  %vm782_vm10 = vcmask 322560  }
  0x14   :  { %909 = vmatpush3.bf16.msra.mxu0 %v908_v7 }
  0x15   :  { %853 = vmatprep.subr.mxu0 %v968_v6  ;;  %v69_v9 = vld [vmem:[%s1255_s1] sm:$0xf]  ;;  %v199_v11 = vld [vmem:[%s1256_s25 + $0x8] sm:$0xff]  ;;  %v200_v13 = vld [vmem:[%s1256_s25 + $0x10] sm:$0xff]  ;;  %s1258_s1 = sld [smem:[#allocation8_spill]] }
  0x16   :  { %v198_v10 = vld [vmem:[%s1256_s25] sm:$0xff]  ;;  %v201_v14 = vld [vmem:[%s1256_s25 + $0x18] sm:$0xff]  ;;  %s1259_s25 = sld [smem:[#allocation9_spill]] }
  0x17   :  { %v911_v12 = vpack.c.bf16 %v199_v11, %v198_v10  ;;  %v914_v15 = vpack.c.bf16 %v201_v14, %v200_v13  ;;  %v798_v16 = vld [vmem:[%s1257_s5] ss:$0 sm:$0xff] }
  0x18   :  { %854 = vmatpush3.msra.mxu0 %v74_v8  ;;  %v804_v14 = vld [vmem:[%s1231_s7] ss:$0 sm:$0xff] }
  0x19   :  { %856 = vmatmul.mubr.msk.f32.vlgmr.msra.gmra.mrb[0].mxu0 %vm82_vm1, %v69_v9  ;;  %916 = vmatprep.subr.bf16.mxu0 %v966_v3 }
  0x1a   :  { %873 = vmatprep.mubr.msk.f32.mxu0 %vm967_vm0, %v968_v6  ;;  %912 = vmatpush3.bf16.msra.mxu1 %v911_v12 }
  0x1b   :  { %913 = vmatprep.subr.bf16.mxu1 %v966_v3  ;;  %v800_v42 = vld [vmem:[%s1258_s1] ss:$0 sm:$0xff]  ;;  %918 = vmatpush3.bf16.msra.mxu0 %v917_v49 }
  0x1c   :  { %v801_v44 = vld [vmem:[%s1259_s25] ss:$0 sm:$0xff]  ;;  %876 = vmatprep.subr.mxu0 %v968_v6 }
  0x1e   :  { %915 = vmatpush3.bf16.msra.mxu1 %v914_v15 }
  0x1f   :  { %881 = vmatprep.subr.mxu1 %v968_v6 }
  0xec   :  { %v152_v17 = vpop.f32.mrb[0].mxu0 }
  0xed   :  { %v153_v18 = vadd.f32 %v798_v16, %v152_v17  ;;  %v857_v19 = vpop.f32.mrb[1].mxu0  ;;  %v805_v16 = vld [vmem:[%s1232_s8] ss:$0 sm:$0xff] }
  0xee   :  { %v407_v19 = vld [vmem:[%s1235_s11] sm:$0xff] }
  0xef   :  { %vm158_vm2 = vcmp.gt.f32.partialorder %v153_v18, 0.0  ;;  %v159_v20 = vmul.f32 0.01, %v153_v18 }
  0xf1   :  { %v160_v21 = vsel %vm158_vm2, %v153_v18, %v159_v20  ;;  %v489_v20 = vld [vmem:[%s1237_s13] sm:$0xff] }
  0xf2   :  { %v162_v22 = vsel %vm161_vm3, %v160_v21, 0.0 }
  0xf3   :  { %v163_v23 = vrot.slane %v162_v22, 4 }
  0xf5   :  { %v164_v24 = vadd.f32 %v163_v23, %v162_v22 }
  0xf7   :  { %v165_v25 = vrot.slane %v164_v24, 2 }
  0xf9   :  { %v166_v26 = vadd.f32 %v165_v25, %v164_v24  ;;  %v570_v25 = vld [vmem:[%s1239_s15] sm:$0xff] }
  0xfb   :  { %v167_v27 = vrot.slane %v166_v26, 1 }
  0xfd   :  { %v168_v28 = vadd.f32 %v167_v27, %v166_v26  ;;  %v571_v26 = vld [vmem:[%s1239_s15 + $0x8] sm:$0xff] }
  0xfe   :  { %v920_v27 = vpack.c.bf16 %v571_v26, %v570_v25 }
  0xff   :  { %v170_v29 = vmul.f32 0.25, %v168_v28  ;;  %v808_v28 = vld [vmem:[%s1236_s12] ss:$0 sm:$0xff] }
 0x101   :  { %v171_v30 = vsub.f32 %v160_v21, %v170_v29  ;;  %v806_v21 = vld [vmem:[%s1234_s10] ss:$0 sm:$0xff] }
 0x103   :  { %v172_v31 = vmul.f32 %v171_v30, %v171_v30 }
 0x105   :  { %v173_v32 = vsel %vm161_vm3, %v172_v31, 0.0 }
 0x106   :  { %v174_v33 = vrot.slane %v173_v32, 4 }
 0x108   :  { %v175_v34 = vadd.f32 %v174_v33, %v173_v32  ;;  %v810_v32 = vld [vmem:[%s1238_s14] ss:$0 sm:$0xff] }
 0x10a   :  { %v176_v35 = vrot.slane %v175_v34, 2 }
 0x10c   :  { %v177_v36 = vadd.f32 %v176_v35, %v175_v34 }
 0x10e   :  { %v178_v37 = vrot.slane %v177_v36, 1 }
 0x110   :  { %v179_v38 = vadd.f32 %v178_v37, %v177_v36  ;;  %v692_v36 = vld [vmem:[%s1243_s19] sm:$0xff]  ;;  %v693_v37 = vld [vmem:[%s1243_s19 + $0x8] sm:$0xff] }
 0x112   :  { %v180_v39 = vmul.f32 0.25, %v179_v38  ;;  %v923_v38 = vpack.c.bf16 %v693_v37, %v692_v36 }
 0x114   :  { %v181_v40 = vadd.f32 1e-05, %v180_v39  ;;  %v695_v39 = vld [vmem:[%s1243_s19 + $0x18] sm:$0xff] }
 0x116   :  { %932 = vrsqrt.f32 %v181_v40 }
 0x120   :  { %v933_v41 = vpop.eup %932 }
 0x121   :  { %v183_v43 = vmul.f32 %v933_v41, %v171_v30  ;;  %v812_v41 = vld [vmem:[%s1240_s16] ss:$0 sm:$0xff] }
 0x123   :  { %v190_v45 = vmul.f32 %v800_v42, %v183_v43 }
 0x125   :  { %v197_v46 = vadd.f32 %v801_v44, %v190_v45 }
 0x127   :  { %867 = vmatmul.mubr.msk.f32.vlgmr.msra.gmra.mrb[0].mxu1 %vm209_vm4, %v197_v46 }
 0x128   :  { %883 = vmatprep.mubr.msk.f32.mxu1 %vm967_vm0, %v968_v6  ;;  %882 = vmatpush3.msra.mxu1 %v489_v20 }
 0x129   :  { %922 = vmatprep.subr.bf16.mxu1 %v966_v3 }
 0x1fa   :  { %v279_v51 = vpop.f32.mrb[0].mxu1 }
 0x1fb   :  { %v280_v52 = vadd.f32 %v802_v50, %v279_v51  ;;  %v868_v53 = vpop.f32.mrb[1].mxu1 }
 0x1fd   :  { %vm285_vm5 = vcmp.gt.f32.partialorder %v280_v52, 0.0  ;;  %v286_v54 = vmul.f32 0.01, %v280_v52 }
 0x1ff   :  { %v287_v55 = vsel %vm285_vm5, %v280_v52, %v286_v54 }
 0x200   :  { %v289_v56 = vsel %vm288_vm6, %v287_v55, 0.0 }
 0x201   :  { %v290_v57 = vrot.slane %v289_v56, 4 }
 0x203   :  { %v291_v58 = vadd.f32 %v290_v57, %v289_v56 }
 0x205   :  { %v292_v59 = vrot.slane %v291_v58, 2 }
 0x207   :  { %v293_v60 = vadd.f32 %v292_v59, %v291_v58 }
 0x209   :  { %v294_v61 = vrot.slane %v293_v60, 1 }
 0x20b   :  { %v295_v62 = vadd.f32 %v294_v61, %v293_v60 }
 0x20d   :  { %v296_v63 = vmul.f32 0.25, %v295_v62 }
 0x20f   :  { %v297_v0 = vsub.f32 %v287_v55, %v296_v63 }
 0x211   :  { %v298_v1 = vmul.f32 %v297_v0, %v297_v0 }
 0x213   :  { %v299_v2 = vsel %vm288_vm6, %v298_v1, 0.0 }
 0x214   :  { %v300_v4 = vrot.slane %v299_v2, 4 }
 0x216   :  { %v301_v5 = vadd.f32 %v300_v4, %v299_v2  ;;  %v814_v2 = vld [vmem:[%s1241_s17] ss:$0 sm:$0xff]  ;;  %s969_s17 = smov [#allocation2]  }
 0x217   :  { %s790_s23 = sshll.u32 %s969_s17, 4  ;;  %s791_s23 = int_to_ptr.vmem [resolvable:$true] %s790_s23 }
 0x218   :  { %v302_v7 = vrot.slane %v301_v5, 2  ;;  %p947_p1 = scmp.lt.s32.totalorder %s791_s23, %s791_s23 }
 0x21a   :  { %v303_v8 = vadd.f32 %v302_v7, %v301_v5  ;;  %v815_v5 = vld [vmem:[%s1242_s18] ss:$0 sm:$0xff]  ;;  %s942_s18 = scalar_lea.vmem %s791_s23, 64 }
 0x21b   :  { %p943_p0 = scmp.ne.s32.totalorder %s791_s23, %s942_s18  ;;  %p948_p2 = scmp.lt.s32.totalorder %s942_s18, %s942_s18 }
 0x21c   :  { %v304_v9 = vrot.slane %v303_v8, 1 }
 0x21d   :  { %p949_p3 = por %p948_p2, %p947_p1 }
 0x21e   :  { %v305_v10 = vadd.f32 %v304_v9, %v303_v8  ;;  %v816_v9 = vld [vmem:[%s1244_s20] ss:$0 sm:$0xff] }
 0x21f   :  { %p950_p4 = pnand %p949_p3, %p943_p0 }
 0x220   :  { %v306_v11 = vmul.f32 0.25, %v305_v10 }
 0x222   :  { %v307_v12 = vadd.f32 1e-05, %v306_v11 }
 0x224   :  { %934 = vrsqrt.f32 %v307_v12 }
 0x22e   :  { %v935_v13 = vpop.eup %934 }
 0x22f   :  { %v309_v15 = vmul.f32 %v935_v13, %v297_v0 }
 0x231   :  { %v316_v17 = vmul.f32 %v804_v14, %v309_v15 }
 0x233   :  { %v323_v18 = vadd.f32 %v805_v16, %v316_v17 }
 0x235   :  { %874 = vmatmul.mubr.msk.f32.vlgmr.msra.gmra.mrb[2].mxu0 %vm333_vm7, %v323_v18 }
 0x236   :  { %877 = vmatpush3.msra.mxu0 %v407_v19  ;;  %878 = vmatprep.mubr.msk.f32.mxu0 %vm967_vm0, %v968_v6 }
 0x237   :  { %919 = vmatprep.subr.bf16.mxu0 %v966_v3 }
 0x308   :  { %v403_v22 = vpop.f32.mrb[2].mxu0 }
 0x309   :  { %v404_v23 = vadd.f32 %v806_v21, %v403_v22  ;;  %v875_v24 = vpop.f32.mrb[3].mxu0 }
 0x30b   :  { %879 = vmatmul.mubr.msk.f32.vlgmr.msra.gmra.mrb[4].mxu0 %vm415_vm8, %v404_v23 }
 0x30c   :  { %890 = vmatprep.mubr.msk.f32.mxu0 %vm967_vm0, %v968_v6  ;;  %921 = vmatpush3.bf16.msra.mxu0 %v920_v27 }
 0x3de   :  { %v485_v29 = vpop.f32.mrb[4].mxu0 }
 0x3df   :  { %v486_v30 = vadd.f32 %v808_v28, %v485_v29  ;;  %v880_v31 = vpop.f32.mrb[5].mxu0 }
 0x3e1   :  { %884 = vmatmul.mubr.msk.f32.vlgmr.msra.gmra.mrb[2].mxu1 %vm415_vm8, %v486_v30 }
 0x3e2   :  { %901 = vmatprep.mubr.msk.f32.mxu1 %vm967_vm0, %v968_v6  ;;  %924 = vmatpush3.bf16.msra.mxu1 %v923_v38  ;;  %v694_v6 = vld [vmem:[%s1243_s19 + $0x10] sm:$0xff] }
 0x3e3   :  { %925 = vmatprep.subr.bf16.mxu1 %v966_v3  ;;  %v926_v40 = vpack.c.bf16 %v695_v39, %v694_v6 }
 0x3e6   :  { %927 = vmatpush3.bf16.msra.mxu1 %v926_v40 }
 0x4b4   :  { %v566_v33 = vpop.f32.mrb[2].mxu1 }
 0x4b5   :  { %v567_v34 = vadd.f32 %v810_v32, %v566_v33  ;;  %v885_v35 = vpop.f32.mrb[3].mxu1 }
 0x4b7   :  { %891 = vmatmul.mubr.msk.f32.vlgmr.msra.gmra.mrb[6].mxu0 %vm333_vm7, %v567_v34 }
 0x58a   :  { %v648_v42 = vpop.f32.mrb[6].mxu0 }
 0x58b   :  { %v649_v43 = vadd.f32 %v812_v41, %v648_v42  ;;  %v892_v44 = vpop.f32.mrb[7].mxu0 }
 0x58d   :  { %vm654_vm9 = vcmp.gt.f32.partialorder %v649_v43, 0.0  ;;  %v655_v45 = vmul.f32 0.01, %v649_v43 }
 0x58f   :  { %v656_v3 = vsel %vm654_vm9, %v649_v43, %v655_v45 }
 0x590   :  { %v657_v46 = vsel %vm161_vm3, %v656_v3, 0.0 }
 0x591   :  { %v658_v47 = vrot.slane %v657_v46, 4 }
 0x593   :  { %v659_v48 = vadd.f32 %v658_v47, %v657_v46 }
 0x595   :  { %v660_v49 = vrot.slane %v659_v48, 2 }
 0x597   :  { %v661_v50 = vadd.f32 %v660_v49, %v659_v48 }
 0x599   :  { %v662_v51 = vrot.slane %v661_v50, 1 }
 0x59b   :  { %v663_v52 = vadd.f32 %v662_v51, %v661_v50 }
 0x59d   :  { %v664_v53 = vmul.f32 0.25, %v663_v52 }
 0x59f   :  { %v665_v54 = vsub.f32 %v656_v3, %v664_v53 }
 0x5a1   :  { %v666_v55 = vmul.f32 %v665_v54, %v665_v54 }
 0x5a3   :  { %v667_v56 = vsel %vm161_vm3, %v666_v55, 0.0 }
 0x5a4   :  { %v668_v57 = vrot.slane %v667_v56, 4 }
 0x5a6   :  { %v669_v58 = vadd.f32 %v668_v57, %v667_v56 }
 0x5a8   :  { %v670_v59 = vrot.slane %v669_v58, 2 }
 0x5aa   :  { %v671_v60 = vadd.f32 %v670_v59, %v669_v58 }
 0x5ac   :  { %v672_v61 = vrot.slane %v671_v60, 1 }
 0x5ae   :  { %v673_v62 = vadd.f32 %v672_v61, %v671_v60 }
 0x5b0   :  { %v674_v63 = vmul.f32 0.25, %v673_v62 }
 0x5b2   :  { %v675_v0 = vadd.f32 1e-05, %v674_v63 }
 0x5b4   :  { %936 = vrsqrt.f32 %v675_v0 }
 0x5be   :  { %v937_v1 = vpop.eup %936 }
 0x5bf   :  { %v677_v4 = vmul.f32 %v937_v1, %v665_v54 }
 0x5c1   :  { %v684_v7 = vmul.f32 %v814_v2, %v677_v4 }
 0x5c3   :  { %v691_v8 = vadd.f32 %v815_v5, %v684_v7 }
 0x5c5   :  { %902 = vmatmul.mubr.msk.f32.vlgmr.msra.gmra.mrb[4].mxu1 %vm209_vm4, %v691_v8 }
 0x698   :  { %v772_v10 = vpop.f32.mrb[4].mxu1 }
 0x699   :  { %v773_v11 = vadd.f32 %v816_v9, %v772_v10  ;;  %v903_v12 = vpop.f32.mrb[5].mxu1 }
 0x69b   :  { %v818_v13 = vmul.f32 -1.442695, %v773_v11 }
 0x69d   :  { %938 = vpow2.f32 %v818_v13 }
 0x6a7   :  { %v939_v14 = vpop.eup %938 }
 0x6a8   :  { %v779_v15 = vadd.f32 1.0, %v939_v14 }
 0x6aa   :  { %940 = vrcp.f32 %v779_v15 }
 0x6b4   :  { %v941_v16 = vpop.eup %940 }
 0x6b5   :  { %783 = vst.msk [vmem:[#allocation2] sm:$0xf] %vm782_vm10, %v941_v16 }
 0x6b6   :  { %953 = shalt.err (!%p950_p4)
}
 0x6b7   :  { %s954_s1 = scalar_lea.hbm %s1245_s21, 64 }
 0x6b8   :  { %p955_p5 = scmp.ne.s32.totalorder %s1245_s21, %s954_s1  ;;  %p958_p6 = scmp.lt.u32.totalorder %s954_s1, %s1245_s21 }
 0x6ba   :  { %p960_p7 = pnand %p958_p6, %p955_p5 }
 0x6bc   :  { %963 = shalt.err (!%p960_p7)
}
 0x6bd   :  { %793 = dma.vmem_to_hbm [thread:$0]  %s791_s23, 64, %s1245_s21, [#allocation3]  }
 0x6be   :  { %964 = dma.done.wait [#allocation3], 64  }
 0x6bf   :  { %965 = vsyncadd [#allocation3], 4294967232 }
 0x6c0   :  { %797 = vsyncpa [#allocation3], 1 }

</bundles_post_ra>
